<compile_context>
chip_gen: v5e
topology: v5e:2x2
jax: 0.10.0
libtpu: 0.0.40
codegen_flags: <defaults>
</compile_context>

<pallas_src>
import jax
import jax.numpy as jnp
from jax.experimental import pallas as pl
from jax.experimental.pallas import tpu as pltpu


def mlp_kernel(x_ref, w1_ref, b1_ref, w2_ref, b2_ref,
               w3_ref, b3_ref, w4_ref, b4_ref, o_ref):
    # layer 1: cast x f32->bf16 in-kernel, (TB,E)@(E,128) -> f32 acc, +bias, tanh.
    h = jnp.tanh(
        jnp.dot(x_ref[...].astype(jnp.bfloat16), w1_ref[...],
                preferred_element_type=jnp.float32) + b1_ref[...])
    # layer 2: (TB,128)bf16 @ (128,256)bf16 -> f32 acc, +bias, tanh.
    h = jnp.tanh(
        jnp.dot(h.astype(jnp.bfloat16), w2_ref[...],
                preferred_element_type=jnp.float32) + b2_ref[...])
    # layer 3: (TB,256)bf16 @ (256,64)bf16 -> f32 acc, +bias, tanh.
    h = jnp.tanh(
        jnp.dot(h.astype(jnp.bfloat16), w3_ref[...],
                preferred_element_type=jnp.float32) + b3_ref[...])
    # layer 4: (TB,64)bf16 @ (64,1)bf16 -> f32 acc, +bias, sigmoid, (TB,1) store.
    z = jnp.dot(h.astype(jnp.bfloat16), w4_ref[...],
                preferred_element_type=jnp.float32) + b4_ref[...]
    o_ref[...] = jax.nn.sigmoid(z)


def nn_forward(x, params, *, tile_b=1024):
    """Run the fused MLP.

    x: (B, E) float32. params: dict of f32 weights/biases (w_i: (in, out), b_i: (1, out)).
    tile_b: rows of x per grid step (multiple of 16; sweep 512/1024/2048 on real batches).
    Returns (B, 1) float32.
    """
    B, E = x.shape

    # 16-row granularity (bf16 matmul operands pack 16 rows per sublane group).
    tile_b = max(16, (int(tile_b) // 16) * 16)
    if B <= tile_b:
        # Small batch: shrink the tile and aim for 2 grid steps so both v7x
        # TensorCores get work on the "parallel" axis.
        tile_b = max(16, ((pl.cdiv(B, 2) + 15) // 16) * 16)
    n_tiles = pl.cdiv(B, tile_b)

    # bf16 weights for the MXU fast path; biases stay f32 (added to f32 accumulators).
    w1 = params["w1"].astype(jnp.bfloat16)
    w2 = params["w2"].astype(jnp.bfloat16)
    w3 = params["w3"].astype(jnp.bfloat16)
    w4 = params["w4"].astype(jnp.bfloat16)
    b1, b2, b3, b4 = params["b1"], params["b2"], params["b3"], params["b4"]

    full = lambda arr: pl.BlockSpec(arr.shape, lambda i: (0, 0))  # resident weights

    flops = 2 * B * (E * 128 + 128 * 256 + 256 * 64 + 64 * 1)
    transcendentals = B * (128 + 256 + 64 + 1)
    bytes_accessed = (x.size * 4
                      + (w1.size + w2.size + w3.size + w4.size) * 2
                      + (b1.size + b2.size + b3.size + b4.size) * 4
                      + B * 4)

    out = pl.pallas_call(
        mlp_kernel,
        out_shape=jax.ShapeDtypeStruct((B, 1), jnp.float32),
        grid_spec=pltpu.PrefetchScalarGridSpec(
            num_scalar_prefetch=0,
            grid=(n_tiles,),
            in_specs=[
                pl.BlockSpec((tile_b, E), lambda i: (i, 0)),   # x tile over batch
                full(w1), full(b1),
                full(w2), full(b2),
                full(w3), full(b3),
                full(w4), full(b4),
            ],
            out_specs=pl.BlockSpec((tile_b, 1), lambda i: (i, 0)),
        ),
        compiler_params=pltpu.CompilerParams(
            dimension_semantics=("parallel",),
            vmem_limit_bytes=32 * 1024 * 1024),
        cost_estimate=pl.CostEstimate(
            flops=flops,
            transcendentals=transcendentals,
            bytes_accessed=bytes_accessed),
    )(x.astype(jnp.float32), w1, b1, w2, b2, w3, b3, w4, b4)

    return out


def init_params(key, embedding_dim):
    """Deterministic init mimicking nn.Linear default (U[-1/sqrt(fan_in), 1/sqrt(fan_in)])."""
    dims = [(embedding_dim, 128), (128, 256), (256, 64), (64, 1)]
    params = {}
    keys = jax.random.split(key, 2 * len(dims))
    for idx, (fan_in, fan_out) in enumerate(dims):
        bound = 1.0 / jnp.sqrt(float(fan_in))
        w = jax.random.uniform(keys[2 * idx], (fan_in, fan_out),
                               minval=-bound, maxval=bound, dtype=jnp.float32)
        b = jax.random.uniform(keys[2 * idx + 1], (1, fan_out),
                               minval=-bound, maxval=bound, dtype=jnp.float32)
        params[f"w{idx + 1}"] = w
        params[f"b{idx + 1}"] = b
    return params


def nn_forward_ref(x, p):
    """Reference with the same mixed precision as the kernel (bf16 operands, f32 acc)."""
    f32 = jnp.float32
    h = jnp.tanh(jnp.dot(x.astype(jnp.bfloat16), p["w1"].astype(jnp.bfloat16),
                         preferred_element_type=f32) + p["b1"])
    h = jnp.tanh(jnp.dot(h.astype(jnp.bfloat16), p["w2"].astype(jnp.bfloat16),
                         preferred_element_type=f32) + p["b2"])
    h = jnp.tanh(jnp.dot(h.astype(jnp.bfloat16), p["w3"].astype(jnp.bfloat16),
                         preferred_element_type=f32) + p["b3"])
    z = jnp.dot(h.astype(jnp.bfloat16), p["w4"].astype(jnp.bfloat16),
                preferred_element_type=f32) + p["b4"]
    return jax.nn.sigmoid(z)


def nn_forward_f32_ref(x, p):
    """Pure f32 reference (matches the PyTorch module exactly)."""
    h = jnp.tanh(x @ p["w1"] + p["b1"])
    h = jnp.tanh(h @ p["w2"] + p["b2"])
    h = jnp.tanh(h @ p["w3"] + p["b3"])
    return jax.nn.sigmoid(h @ p["w4"] + p["b4"])


if __name__ == "__main__":
    embedding_dim = 32
    batch = 64   # small, exercises a 2-step grid (one block per TensorCore on v7x)

    key = jax.random.PRNGKey(0)
    k_x, k_p = jax.random.split(key)
    x = jax.random.normal(k_x, (batch, embedding_dim), dtype=jnp.float32)
    params = init_params(k_p, embedding_dim)

    out = jax.block_until_ready(nn_forward(x, params))

    ref_mixed = nn_forward_ref(x, params)
    ref_f32 = nn_forward_f32_ref(x, params)

    assert out.shape == (batch, 1)
    # Tight check against the matching mixed-precision reference.
    assert jnp.allclose(out, ref_mixed, atol=5e-4, rtol=5e-4), \
        float(jnp.max(jnp.abs(out - ref_mixed)))
    # Loose sanity check against the pure-f32 (PyTorch-equivalent) reference.
    assert jnp.allclose(out, ref_f32, atol=3e-2, rtol=3e-2), \
        float(jnp.max(jnp.abs(out - ref_f32)))

    print("KERNEL_OK")
</pallas_src>

<mosaic_0001>
module attributes {stable_mosaic.version = 11 : i64} {
  func.func @mlp_kernel(%arg0: i32, %arg1: memref<32x32xf32, #tpu.memory_space<vmem>>, %arg2: memref<32x128xbf16, #tpu.memory_space<vmem>>, %arg3: memref<1x128xf32, #tpu.memory_space<vmem>>, %arg4: memref<128x256xbf16, #tpu.memory_space<vmem>>, %arg5: memref<1x256xf32, #tpu.memory_space<vmem>>, %arg6: memref<256x64xbf16, #tpu.memory_space<vmem>>, %arg7: memref<1x64xf32, #tpu.memory_space<vmem>>, %arg8: memref<64x1xbf16, #tpu.memory_space<vmem>>, %arg9: memref<1x1xf32, #tpu.memory_space<vmem>>, %arg10: memref<32x1xf32, #tpu.memory_space<vmem>>) attributes {dimension_semantics = [#tpu.dimension_semantics<parallel>], iteration_bounds = array<i64: 2>, scalar_prefetch = 0 : i64, scratch_operands = 0 : i64, tpu.core_type = #tpu.core_type<tc>, window_params = [{transform_indices = @transform_0, window_bounds = array<i64: 32, 32>}, {pipeline_mode = #tpu.pipeline_mode<synchronous>, transform_indices = @transform_1, window_bounds = array<i64: 32, 128>}, {pipeline_mode = #tpu.pipeline_mode<synchronous>, transform_indices = @transform_2, window_bounds = array<i64: 1, 128>}, {pipeline_mode = #tpu.pipeline_mode<synchronous>, transform_indices = @transform_3, window_bounds = array<i64: 128, 256>}, {pipeline_mode = #tpu.pipeline_mode<synchronous>, transform_indices = @transform_4, window_bounds = array<i64: 1, 256>}, {pipeline_mode = #tpu.pipeline_mode<synchronous>, transform_indices = @transform_5, window_bounds = array<i64: 256, 64>}, {pipeline_mode = #tpu.pipeline_mode<synchronous>, transform_indices = @transform_6, window_bounds = array<i64: 1, 64>}, {pipeline_mode = #tpu.pipeline_mode<synchronous>, transform_indices = @transform_7, window_bounds = array<i64: 64, 1>}, {pipeline_mode = #tpu.pipeline_mode<synchronous>, transform_indices = @transform_8, window_bounds = array<i64: 1, 1>}, {transform_indices = @transform_9, window_bounds = array<i64: 32, 1>}]} {
    %c0 = arith.constant 0 : index
    %c0_0 = arith.constant 0 : index
    %0 = vector.load %arg1[%c0, %c0_0] : memref<32x32xf32, #tpu.memory_space<vmem>>, vector<32x32xf32>
    %1 = arith.truncf %0 : vector<32x32xf32> to vector<32x32xbf16>
    %c0_1 = arith.constant 0 : index
    %c0_2 = arith.constant 0 : index
    %2 = vector.load %arg2[%c0_1, %c0_2] : memref<32x128xbf16, #tpu.memory_space<vmem>>, vector<32x128xbf16>
    %cst = arith.constant dense<0.000000e+00> : vector<32x128xf32>
    %3 = tpu.matmul %1, %2, %cst {dimension_numbers = #tpu.dot_dimension_numbers<[1], [0], [0], [1], [0, 0, 1, 1], [], []>} : vector<32x32xbf16>, vector<32x128xbf16>, vector<32x128xf32> -> vector<32x128xf32>
    %c0_3 = arith.constant 0 : index
    %c0_4 = arith.constant 0 : index
    %4 = vector.load %arg3[%c0_3, %c0_4] : memref<1x128xf32, #tpu.memory_space<vmem>>, vector<1x128xf32>
    %5 = vector.broadcast %4 : vector<1x128xf32> to vector<32x128xf32>
    %6 = arith.addf %3, %5 : vector<32x128xf32>
    %7 = math.tanh %6 : vector<32x128xf32>
    %8 = arith.truncf %7 : vector<32x128xf32> to vector<32x128xbf16>
    %c0_5 = arith.constant 0 : index
    %c0_6 = arith.constant 0 : index
    %9 = vector.load %arg4[%c0_5, %c0_6] : memref<128x256xbf16, #tpu.memory_space<vmem>>, vector<128x256xbf16>
    %cst_7 = arith.constant dense<0.000000e+00> : vector<32x256xf32>
    %10 = tpu.matmul %8, %9, %cst_7 {dimension_numbers = #tpu.dot_dimension_numbers<[1], [0], [0], [1], [0, 0, 1, 1], [], []>} : vector<32x128xbf16>, vector<128x256xbf16>, vector<32x256xf32> -> vector<32x256xf32>
    %c0_8 = arith.constant 0 : index
    %c0_9 = arith.constant 0 : index
    %11 = vector.load %arg5[%c0_8, %c0_9] : memref<1x256xf32, #tpu.memory_space<vmem>>, vector<1x256xf32>
    %12 = vector.broadcast %11 : vector<1x256xf32> to vector<32x256xf32>
    %13 = arith.addf %10, %12 : vector<32x256xf32>
    %14 = math.tanh %13 : vector<32x256xf32>
    %15 = arith.truncf %14 : vector<32x256xf32> to vector<32x256xbf16>
    %c0_10 = arith.constant 0 : index
    %c0_11 = arith.constant 0 : index
    %16 = vector.load %arg6[%c0_10, %c0_11] : memref<256x64xbf16, #tpu.memory_space<vmem>>, vector<256x64xbf16>
    %cst_12 = arith.constant dense<0.000000e+00> : vector<32x64xf32>
    %17 = tpu.matmul %15, %16, %cst_12 {dimension_numbers = #tpu.dot_dimension_numbers<[1], [0], [0], [1], [0, 0, 1, 1], [], []>} : vector<32x256xbf16>, vector<256x64xbf16>, vector<32x64xf32> -> vector<32x64xf32>
    %c0_13 = arith.constant 0 : index
    %c0_14 = arith.constant 0 : index
    %18 = vector.load %arg7[%c0_13, %c0_14] : memref<1x64xf32, #tpu.memory_space<vmem>>, vector<1x64xf32>
    %19 = vector.broadcast %18 : vector<1x64xf32> to vector<32x64xf32>
    %20 = arith.addf %17, %19 : vector<32x64xf32>
    %21 = math.tanh %20 : vector<32x64xf32>
    %22 = arith.truncf %21 : vector<32x64xf32> to vector<32x64xbf16>
    %c0_15 = arith.constant 0 : index
    %c0_16 = arith.constant 0 : index
    %23 = vector.load %arg8[%c0_15, %c0_16] : memref<64x1xbf16, #tpu.memory_space<vmem>>, vector<64x1xbf16>
    %cst_17 = arith.constant dense<0.000000e+00> : vector<32x1xf32>
    %24 = tpu.matmul %22, %23, %cst_17 {dimension_numbers = #tpu.dot_dimension_numbers<[1], [0], [0], [1], [0, 0, 1, 1], [], []>} : vector<32x64xbf16>, vector<64x1xbf16>, vector<32x1xf32> -> vector<32x1xf32>
    %c0_18 = arith.constant 0 : index
    %c0_19 = arith.constant 0 : index
    %25 = vector.load %arg9[%c0_18, %c0_19] : memref<1x1xf32, #tpu.memory_space<vmem>>, vector<1x1xf32>
    %26 = vector.broadcast %25 : vector<1x1xf32> to vector<32x1xf32>
    %27 = arith.addf %24, %26 : vector<32x1xf32>
    %28 = arith.negf %27 : vector<32x1xf32>
    %29 = math.exp %28 : vector<32x1xf32>
    %cst_20 = arith.constant 1.000000e+00 : f32
    %30 = vector.broadcast %cst_20 : f32 to vector<32x1xf32>
    %31 = arith.addf %30, %29 : vector<32x1xf32>
    %32 = arith.divf %30, %31 : vector<32x1xf32>
    %c0_21 = arith.constant 0 : index
    %c0_22 = arith.constant 0 : index
    %33 = vector.load %arg10[%c0_21, %c0_22] : memref<32x1xf32, #tpu.memory_space<vmem>>, vector<32x1xf32>
    tpu.vector_store %arg10[%c0_21, %c0_22], %32 {strides = array<i32>} : memref<32x1xf32, #tpu.memory_space<vmem>>, vector<32x1xf32>,
    return
  }
  func.func @transform_0(%arg0: i32) -> (i32, i32) {
    %c0_i32 = arith.constant 0 : i32
    %c0_i32_0 = arith.constant 0 : i32
    return %arg0, %c0_i32 : i32, i32
  }
  func.func @transform_1(%arg0: i32) -> (i32, i32) {
    %c0_i32 = arith.constant 0 : i32
    %c0_i32_0 = arith.constant 0 : i32
    %c0_i32_1 = arith.constant 0 : i32
    return %c0_i32, %c0_i32_0 : i32, i32
  }
  func.func @transform_2(%arg0: i32) -> (i32, i32) {
    %c0_i32 = arith.constant 0 : i32
    %c0_i32_0 = arith.constant 0 : i32
    %c0_i32_1 = arith.constant 0 : i32
    return %c0_i32, %c0_i32_0 : i32, i32
  }
  func.func @transform_3(%arg0: i32) -> (i32, i32) {
    %c0_i32 = arith.constant 0 : i32
    %c0_i32_0 = arith.constant 0 : i32
    %c0_i32_1 = arith.constant 0 : i32
    return %c0_i32, %c0_i32_0 : i32, i32
  }
  func.func @transform_4(%arg0: i32) -> (i32, i32) {
    %c0_i32 = arith.constant 0 : i32
    %c0_i32_0 = arith.constant 0 : i32
    %c0_i32_1 = arith.constant 0 : i32
    return %c0_i32, %c0_i32_0 : i32, i32
  }
  func.func @transform_5(%arg0: i32) -> (i32, i32) {
    %c0_i32 = arith.constant 0 : i32
    %c0_i32_0 = arith.constant 0 : i32
    %c0_i32_1 = arith.constant 0 : i32
    return %c0_i32, %c0_i32_0 : i32, i32
  }
  func.func @transform_6(%arg0: i32) -> (i32, i32) {
    %c0_i32 = arith.constant 0 : i32
    %c0_i32_0 = arith.constant 0 : i32
    %c0_i32_1 = arith.constant 0 : i32
    return %c0_i32, %c0_i32_0 : i32, i32
  }
  func.func @transform_7(%arg0: i32) -> (i32, i32) {
    %c0_i32 = arith.constant 0 : i32
    %c0_i32_0 = arith.constant 0 : i32
    %c0_i32_1 = arith.constant 0 : i32
    return %c0_i32, %c0_i32_0 : i32, i32
  }
  func.func @transform_8(%arg0: i32) -> (i32, i32) {
    %c0_i32 = arith.constant 0 : i32
    %c0_i32_0 = arith.constant 0 : i32
    %c0_i32_1 = arith.constant 0 : i32
    return %c0_i32, %c0_i32_0 : i32, i32
  }
  func.func @transform_9(%arg0: i32) -> (i32, i32) {
    %c0_i32 = arith.constant 0 : i32
    %c0_i32_0 = arith.constant 0 : i32
    return %arg0, %c0_i32 : i32, i32
  }
}

</mosaic_0001>

<bundles_post_ra>
// kernel: tpu_custom_call.1
= control target key start
LH: loop header
LB: loop body
LE: loop exit
PB: predicated region body
PF: predicated region fallthrough
CT: control target
= control target key end

     0   :  { %s1257_s11 = smov 0   ;;  %s1462_s0 = inlined_call_operand.vmem [shape: f32[64,32], index: 0, kind: input, shape index: {}]   ;;  %s1463_s1 = inlined_call_operand.vmem [shape: bf16[32,128], index: 1, kind: input, shape index: {}]   ;;  %s1464_s2 = inlined_call_operand.vmem [shape: f32[1,128], index: 2, kind: input, shape index: {}]   ;;  %s1465_s3 = inlined_call_operand.vmem [shape: bf16[128,256], index: 3, kind: input, shape index: {}]   ;;  %s1466_s4 = inlined_call_operand.vmem [shape: f32[1,256], index: 4, kind: input, shape index: {}]   ;;  %s1467_s5 = inlined_call_operand.vmem [shape: bf16[256,64], index: 5, kind: input, shape index: {}]   ;;  %s1468_s6 = inlined_call_operand.vmem [shape: f32[1,64], index: 6, kind: input, shape index: {}]   ;;  %s1469_s7 = inlined_call_operand.vmem [shape: bf16[64,1], index: 7, kind: input, shape index: {}]   ;;  %s1470_s8 = inlined_call_operand.<no memory space> [shape: f32[1,1], index: 8, kind: input, shape index: {}]   ;;  %s1471_s9 = inlined_call_operand.vmem [shape: f32[64,1], index: 9, kind: output, shape index: {}]  }
   0x1   :  { %v14_v0 = vstv %s1470_s8 }
   0x2   :  { %15 = vst [vmem:[#allocation2] sm:$0x1] %v14_v0 }
   0x3 LB: > { %s924_s12 = sadd.s32 4294967295, %s1202_s11   ;;  %p928_p0 = scmp.ge.s32.totalorder %s1202_s11, 1  ;;  %s1202_s11 = sphi %s1257_s11, %s21_s11  }
   0x4   : > { %p290_p1 = scmp.lt.s32.totalorder %s1202_s11, 3 }
   0x6   : > { %p291_p2 = pnand %p928_p0, %p290_p1 }
   0x7   : > { %s929_s8 = sshll.u32 (!%p291_p2), %s924_s12, 2 }
   0x8   : > { %294 = sbr.rel (%p291_p2) target bundleno = 652 (0x28c), region = 56  ;;  %p327_p3 = scmp.lt.s32.totalorder (!%p291_p2), %s929_s8, 7 }
   0xd   : > { %v1096_v1 = vld [vmem:[%s1463_s1 + $0x8] sm:$0xff]  ;;  %v1001_v2 = vld [vmem:[%s1465_s3 + $0x70] sm:$0xf]  ;;  %v1095_v3 = vld [vmem:[%s1463_s1] sm:$0xff]  ;;  %s1473_s8 = smov (!%p327_p3, %s929_s8), 7  ;;  %vm365_vm0 = vcmask 261120  }
   0xe   : > { %v1112_v4 = vld [vmem:[%s1465_s3 + $0x74] sm:$0xf0]  ;;  %v1111_v5 = vld [vmem:[%s1465_s3 + $0x74] sm:$0xf]  ;;  %378 = vmatpush.bf16.msra.mxu0 %v1096_v1  ;;  %v1003_v7 = vld [vmem:[%s1465_s3 + $0x78] sm:$0xf0] }
   0xf   : > { %v1002_v6 = vor.u32 %v1112_v4, %v1001_v2  ;;  %v993_v8 = vld [vmem:[%s1465_s3 + $0x60] sm:$0xf]  ;;  %v1110_v9 = vld [vmem:[%s1465_s3 + $0x64] sm:$0xf0]  ;;  %v1006_v10 = vor.u32 %v1111_v5, %v1003_v7  ;;  %v1109_v11 = vld [vmem:[%s1465_s3 + $0x64] sm:$0xf] }
  0x10   : > { %v995_v12 = vld [vmem:[%s1465_s3 + $0x68] sm:$0xf0]  ;;  %v994_v13 = vor.u32 %v1110_v9, %v993_v8  ;;  %v985_v14 = vld [vmem:[%s1465_s3 + $0x50] sm:$0xf]  ;;  %v1108_v15 = vld [vmem:[%s1465_s3 + $0x54] sm:$0xf0] }
  0x11   : > { %499 = vmatpush.bf16.msra.mxu1 %v1002_v6  ;;  %s930_s17 = sshll.u32 %s1473_s8, 3  ;;  %518 = vmatpush.bf16.msra.mxu2 %v1006_v10  ;;  %v998_v16 = vor.u32 %v1109_v11, %v995_v12  ;;  %v1107_v17 = vld [vmem:[%s1465_s3 + $0x54] sm:$0xf]  ;;  %v987_v18 = vld [vmem:[%s1465_s3 + $0x58] sm:$0xf0]  ;;  %v986_v22 = vor.u32 %v1108_v15, %v985_v14  ;;  %v1118_v2 = vld [vmem:[%s1467_s5 + $0x28] sm:$0xff] }
  0x12   : > { %379 = vmatpush.bf16.msra.mxu0 %v1095_v3  ;;  %s330_s22 = scalar_lea.vmem %s1462_s0, %s930_s17  ;;  %v990_v23 = vor.u32 %v1107_v17, %v987_v18  ;;  %v977_v27 = vld [vmem:[%s1465_s3 + $0x40] sm:$0xf]  ;;  %v1106_v28 = vld [vmem:[%s1465_s3 + $0x44] sm:$0xf0]  ;;  %v1105_v29 = vld [vmem:[%s1465_s3 + $0x44] sm:$0xf]  ;;  %s1449_s18 = scalar_lea.vmem %s1471_s9, %s930_s17 }
  0x13   : > { %v339_v19 = vld [vmem:[%s330_s22] sm:$0xff]  ;;  %v340_v20 = vld [vmem:[%s330_s22 + $0x8] sm:$0xff]  ;;  %v341_v24 = vld [vmem:[%s330_s22 + $0x10] sm:$0xff]  ;;  %v978_v30 = vor.u32 %v1106_v28, %v977_v27  ;;  %vm761_vm1 = vcmask 523264   ;;  %vm863_vm5 = vcmask 7168  }
  0x14   : > { %v343_v21 = vpack.c.bf16 %v340_v20, %v339_v19  ;;  %v342_v25 = vld [vmem:[%s330_s22 + $0x18] sm:$0xff]  ;;  %v979_v31 = vld [vmem:[%s1465_s3 + $0x48] sm:$0xf0]  ;;  %v969_v33 = vld [vmem:[%s1465_s3 + $0x30] sm:$0xf] }
  0x15   : > { %500 = vmatpush.bf16.msra.mxu1 %v994_v13  ;;  %519 = vmatpush.bf16.msra.mxu2 %v998_v16  ;;  %v344_v26 = vpack.c.bf16 %v342_v25, %v341_v24  ;;  %v982_v32 = vor.u32 %v1105_v29, %v979_v31  ;;  %v1104_v34 = vld [vmem:[%s1465_s3 + $0x34] sm:$0xf0]  ;;  %v1103_v35 = vld [vmem:[%s1465_s3 + $0x34] sm:$0xf]  ;;  %v971_v37 = vld [vmem:[%s1465_s3 + $0x38] sm:$0xf0] }
  0x16   : > { %941 = vmatmul.msk.bf16.vlgmr.msra.gmra.mxu0 %vm365_vm0, %v343_v21  ;;  %v970_v36 = vor.u32 %v1104_v34, %v969_v33  ;;  %v974_v38 = vor.u32 %v1103_v35, %v971_v37  ;;  %v961_v39 = vld [vmem:[%s1465_s3 + $0x20] sm:$0xf]  ;;  %v1102_v40 = vld [vmem:[%s1465_s3 + $0x24] sm:$0xf0]  ;;  %v1101_v41 = vld [vmem:[%s1465_s3 + $0x24] sm:$0xf] }
  0x17   : > { %v962_v42 = vor.u32 %v1102_v40, %v961_v39  ;;  %v963_v43 = vld [vmem:[%s1465_s3 + $0x28] sm:$0xf0]  ;;  %v953_v45 = vld [vmem:[%s1465_s3 + $0x10] sm:$0xf]  ;;  %v1100_v46 = vld [vmem:[%s1465_s3 + $0x14] sm:$0xf0] }
  0x18   : > { %v966_v44 = vor.u32 %v1101_v41, %v963_v43  ;;  %v1099_v47 = vld [vmem:[%s1465_s3 + $0x14] sm:$0xf]  ;;  %v954_v48 = vor.u32 %v1100_v46, %v953_v45  ;;  %v955_v49 = vld [vmem:[%s1465_s3 + $0x18] sm:$0xf0]  ;;  %v945_v51 = vld [vmem:[%s1465_s3] sm:$0xf] }
  0x19   : > { %501 = vmatpush.bf16.msra.mxu1 %v986_v22  ;;  %520 = vmatpush.bf16.msra.mxu2 %v990_v23  ;;  %v958_v50 = vor.u32 %v1099_v47, %v955_v49  ;;  %v1098_v52 = vld [vmem:[%s1465_s3 + $0x4] sm:$0xf0]  ;;  %v1097_v53 = vld [vmem:[%s1465_s3 + $0x4] sm:$0xf]  ;;  %v947_v55 = vld [vmem:[%s1465_s3 + $0x8] sm:$0xf0] }
  0x1a   : > { %v946_v54 = vor.u32 %v1098_v52, %v945_v51  ;;  %v950_v56 = vor.u32 %v1097_v53, %v947_v55  ;;  %v1145_v58 = vld [vmem:[%s1464_s2] ss:$0 sm:$0xff]  ;;  %v1120_v59 = vld [vmem:[%s1467_s5 + $0x38] sm:$0xff]  ;;  %v1119_v62 = vld [vmem:[%s1467_s5 + $0x30] sm:$0xff] }
  0x1b   : > { %v1128_v60 = vld [vmem:[%s1467_s5 + $0x78] sm:$0xff]  ;;  %681 = vmatpush.bf16.msra.mxu3 %v1120_v59  ;;  %v1127_v63 = vld [vmem:[%s1467_s5 + $0x70] sm:$0xff]  ;;  %v1117_v13 = vld [vmem:[%s1467_s5 + $0x20] sm:$0xff] }
  0x1c   : > { %700 = vmatpush.bf16.msrb.mxu0 %v1128_v60  ;;  %v1126_v14 = vld [vmem:[%s1467_s5 + $0x68] sm:$0xff]  ;;  %v1116_v15 = vld [vmem:[%s1467_s5 + $0x18] sm:$0xff]  ;;  %v1125_v16 = vld [vmem:[%s1467_s5 + $0x60] sm:$0xff] }
  0x1d   : > { %502 = vmatpush.bf16.msra.mxu1 %v978_v30  ;;  %521 = vmatpush.bf16.msra.mxu2 %v982_v32  ;;  %v1115_v17 = vld [vmem:[%s1467_s5 + $0x10] sm:$0xff]  ;;  %v1124_v18 = vld [vmem:[%s1467_s5 + $0x58] sm:$0xff]  ;;  %v1114_v19 = vld [vmem:[%s1467_s5 + $0x8] sm:$0xff] }
  0x1e   : > { %v1123_v20 = vld [vmem:[%s1467_s5 + $0x50] sm:$0xff]  ;;  %v1113_v21 = vld [vmem:[%s1467_s5] sm:$0xff]  ;;  %v1122_v22 = vld [vmem:[%s1467_s5 + $0x48] sm:$0xff] }
  0x1f   : > { %682 = vmatpush.bf16.msra.mxu3 %v1119_v62  ;;  %v1121_v23 = vld [vmem:[%s1467_s5 + $0x40] sm:$0xff]  ;;  %v1132_v55 = vld [vmem:[%s1469_s7 + $0x18] sm:$0xff] }
  0x20   : > { %701 = vmatpush.bf16.msrb.mxu0 %v1127_v63  ;;  %v413_v24 = vld [vmem:[%s1466_s4] sm:$0x3] }
  0x21   : > { %503 = vmatpush.bf16.msra.mxu1 %v970_v36  ;;  %522 = vmatpush.bf16.msra.mxu2 %v974_v38  ;;  %v416_v29 = vperm.slane %v413_v24, 1  ;;  %v1146_v59 = vld [vmem:[%s1468_s6] ss:$0 sm:$0xff] }
  0x23   : > { %683 = vmatpush.bf16.msra.mxu3 %v1118_v2 }
  0x24   : > { %702 = vmatpush.bf16.msrb.mxu0 %v1126_v14 }
  0x25   : > { %504 = vmatpush.bf16.msra.mxu1 %v962_v42  ;;  %523 = vmatpush.bf16.msra.mxu2 %v966_v44 }
  0x26   : > { %942 = vmatmul.msk.bf16.gmra.mxu0 %vm365_vm0, %v344_v26  ;;  %v415_v26 = vperm.slane %v413_v24, 0 }
  0x27   : > { %684 = vmatpush.bf16.msra.mxu3 %v1117_v13 }
  0x28   : > { %703 = vmatpush.bf16.msrb.mxu0 %v1125_v16 }
  0x29   : > { %505 = vmatpush.bf16.msra.mxu1 %v954_v48  ;;  %524 = vmatpush.bf16.msra.mxu2 %v958_v50 }
  0x2b   : > { %685 = vmatpush.bf16.msra.mxu3 %v1116_v15 }
  0x2c   : > { %704 = vmatpush.bf16.msrb.mxu0 %v1124_v18  ;;  %v1147_v18 = vld [vmem:[#allocation2] ss:$0 sm:$0xff] }
  0x2d   : > { %506 = vmatpush.bf16.msra.mxu1 %v946_v54  ;;  %525 = vmatpush.bf16.msra.mxu2 %v950_v56  ;;  %v1131_v56 = vld [vmem:[%s1469_s7 + $0x10] sm:$0xff] }
  0x2f   : > { %686 = vmatpush.bf16.msra.mxu3 %v1115_v17 }
  0x30   : > { %705 = vmatpush.bf16.msrb.mxu0 %v1123_v20 }
  0x31   : > { %1133 = vmatpush.bf16.msrb.mxu2 %v1132_v55  ;;  %772 = vmatpush.bf16.msrb.mxu1 %v1132_v55 }
  0x33   : > { %687 = vmatpush.bf16.msra.mxu3 %v1114_v19 }
  0x34   : > { %706 = vmatpush.bf16.msrb.mxu0 %v1122_v22 }
  0x35   : > { %773 = vmatpush.bf16.msrb.mxu1 %v1131_v56  ;;  %1134 = vmatpush.bf16.msrb.mxu2 %v1131_v56 }
  0x37   : > { %688 = vmatpush.bf16.msra.mxu3 %v1113_v21 }
  0x38   : > { %707 = vmatpush.bf16.msrb.mxu0 %v1121_v23 }
  0x93   : > { %v381_v57 = vpop.f32.mrf.mxu0 }
  0x94   : > { %v382_v61 = vadd.f32 %v1145_v58, %v381_v57  ;;  %v1130_v57 = vld [vmem:[%s1469_s7 + $0x8] sm:$0xff] }
  0x95   : > { %774 = vmatpush.bf16.msrb.mxu1 %v1130_v57  ;;  %1135 = vmatpush.bf16.msrb.mxu2 %v1130_v57 }
  0x96   : > { %1148 = vtanh.f32 %v382_v61 }
  0x9b   : > { %v383_v0 = vpop.f32.mrf.mxu0 }
  0x9c   : > { %v384_v1 = vadd.f32 %v1145_v58, %v383_v0  ;;  %v1149_v3 = vpop.eup %1148 }
  0x9e   : > { %1150 = vtanh.f32 %v384_v1 }
  0xa3   : > { %v386_v4 = vpop.f32.mrf.mxu0 }
  0xa4   : > { %v1151_v5 = vpop.eup %1150  ;;  %v387_v7 = vadd.f32 %v1145_v58, %v386_v4 }
  0xa5   : > { %v395_v6 = vpack.c.bf16 %v1151_v5, %v1149_v3 }
  0xa6   : > { %1152 = vtanh.f32 %v387_v7 }
  0xa7   : > { %507 = vmatmul.bf16.vlgmr.msra.gmra.mxu1 %v395_v6  ;;  %526 = vmatmul.bf16.vlgmr.msra.gmra.mxu2 %v395_v6 }
  0xab   : > { %v388_v8 = vpop.f32.mrf.mxu0 }
  0xac   : > { %v389_v9 = vadd.f32 %v1145_v58, %v388_v8  ;;  %v1153_v10 = vpop.eup %1152  ;;  %v1129_v58 = vld [vmem:[%s1469_s7] sm:$0xff] }
  0xad   : > { %775 = vmatpush.bf16.msrb.mxu1 %v1129_v58  ;;  %1136 = vmatpush.bf16.msrb.mxu2 %v1129_v58 }
  0xae   : > { %1154 = vtanh.f32 %v389_v9 }
  0xb4   : > { %v1155_v11 = vpop.eup %1154 }
  0xb5   : > { %v396_v12 = vpack.c.bf16 %v1155_v11, %v1153_v10 }
  0xb7   : > { %512 = vmatmul.bf16.gmra.mxu1 %v396_v12  ;;  %531 = vmatmul.bf16.gmra.mxu2 %v396_v12 }
 0x124   : > { %v508_v25 = vpop.f32.mrf.mxu1 }
 0x125   : > { %v509_v27 = vadd.f32 %v508_v25, %v415_v26 }
 0x127   : > { %1156 = vtanh.f32 %v509_v27 }
 0x12a   : > { %v527_v28 = vpop.f32.mrf.mxu2 }
 0x12b   : > { %v528_v32 = vadd.f32 %v527_v28, %v416_v29 }
 0x12c   : > { %v510_v30 = vpop.f32.mrf.mxu1 }
 0x12d   : > { %v511_v31 = vadd.f32 %v510_v30, %v415_v26  ;;  %v1157_v35 = vpop.eup %1156 }
 0x12f   : > { %1158 = vtanh.f32 %v511_v31 }
 0x130   : > { %1160 = vtanh.f32 %v528_v32 }
 0x132   : > { %v529_v33 = vpop.f32.mrf.mxu2 }
 0x133   : > { %v530_v34 = vadd.f32 %v529_v33, %v416_v29 }
 0x134   : > { %v513_v36 = vpop.f32.mrf.mxu1 }
 0x135   : > { %v1159_v37 = vpop.eup %1158  ;;  %1162 = vtanh.f32 %v530_v34  ;;  %v514_v40 = vadd.f32 %v513_v36, %v415_v26 }
 0x136   : > { %v545_v38 = vpack.c.bf16 %v1159_v37, %v1157_v35  ;;  %v1161_v39 = vpop.eup %1160 }
 0x137   : > { %1164 = vtanh.f32 %v514_v40 }
 0x138   : > { %689 = vmatmul.bf16.vlgmr.msra.gmra.mxu3 %v545_v38 }
 0x13a   : > { %v532_v41 = vpop.f32.mrf.mxu2 }
 0x13b   : > { %v1163_v42 = vpop.eup %1162  ;;  %v533_v46 = vadd.f32 %v532_v41, %v416_v29 }
 0x13c   : > { %v515_v43 = vpop.f32.mrf.mxu1  ;;  %v546_v44 = vpack.c.bf16 %v1163_v42, %v1161_v39 }
 0x13d   : > { %v516_v45 = vadd.f32 %v515_v43, %v415_v26  ;;  %v1165_v49 = vpop.eup %1164 }
 0x13e   : > { %708 = vmatmul.bf16.vlgmr.msrb.gmra.mxu0 %v546_v44 }
 0x13f   : > { %1166 = vtanh.f32 %v516_v45 }
 0x140   : > { %1168 = vtanh.f32 %v533_v46 }
 0x142   : > { %v534_v47 = vpop.f32.mrf.mxu2 }
 0x143   : > { %v535_v48 = vadd.f32 %v534_v47, %v416_v29 }
 0x145   : > { %v1167_v50 = vpop.eup %1166  ;;  %1170 = vtanh.f32 %v535_v48 }
 0x146   : > { %v547_v51 = vpack.c.bf16 %v1167_v50, %v1165_v49  ;;  %v1169_v52 = vpop.eup %1168 }
 0x148   : > { %694 = vmatmul.bf16.gmra.mxu3 %v547_v51 }
 0x14b   : > { %v1171_v53 = vpop.eup %1170 }
 0x14c   : > { %v548_v54 = vpack.c.bf16 %v1171_v53, %v1169_v52 }
 0x14e   : > { %713 = vmatmul.bf16.gmra.mxu0 %v548_v54 }
 0x1bb   : > { %v690_v60 = vpop.f32.mrf.mxu3  ;;  %v709_v61 = vpop.f32.mrf.mxu0 }
 0x1bc   : > { %v691_v62 = vadd.f32 %v1146_v59, %v690_v60 }
 0x1be   : > { %v710_v63 = vadd.f32 %v709_v61, %v691_v62 }
 0x1c0   : > { %1172 = vtanh.f32 %v710_v63 }
 0x1c3   : > { %v692_v0 = vpop.f32.mrf.mxu3  ;;  %v711_v1 = vpop.f32.mrf.mxu0 }
 0x1c4   : > { %v693_v2 = vadd.f32 %v1146_v59, %v692_v0 }
 0x1c6   : > { %v712_v3 = vadd.f32 %v711_v1, %v693_v2  ;;  %v1173_v6 = vpop.eup %1172 }
 0x1c8   : > { %1174 = vtanh.f32 %v712_v3 }
 0x1cb   : > { %v695_v4 = vpop.f32.mrf.mxu3  ;;  %v714_v5 = vpop.f32.mrf.mxu0 }
 0x1cc   : > { %v696_v8 = vadd.f32 %v1146_v59, %v695_v4 }
 0x1ce   : > { %v1175_v7 = vpop.eup %1174  ;;  %v715_v10 = vadd.f32 %v714_v5, %v696_v8 }
 0x1cf   : > { %v723_v9 = vpack.c.bf16 %v1175_v7, %v1173_v6 }
 0x1d0   : > { %1176 = vtanh.f32 %v715_v10 }
 0x1d1   : > { %1087 = vmatmul.msk.bf16.vlgmr.msrb.gmra.mxu1 %vm761_vm1, %v723_v9 }
 0x1d3   : > { %v697_v11 = vpop.f32.mrf.mxu3  ;;  %v716_v13 = vpop.f32.mrf.mxu0 }
 0x1d4   : > { %v698_v12 = vadd.f32 %v1146_v59, %v697_v11 }
 0x1d6   : > { %v717_v14 = vadd.f32 %v716_v13, %v698_v12  ;;  %v1177_v15 = vpop.eup %1176 }
 0x1d8   : > { %1178 = vtanh.f32 %v717_v14 }
 0x1de   : > { %v1179_v16 = vpop.eup %1178 }
 0x1df   : > { %v724_v17 = vpack.c.bf16 %v1179_v16, %v1177_v15 }
 0x1e1   : > { %1088 = vmatmul.msk.bf16.vlgmr.msrb.gmra.mxu2 %vm761_vm1, %v724_v17 }
 0x24e   : > { %v777_v19 = vpop.f32.mrf.mxu1 }
 0x24f   : > { %v778_v20 = vadd.f32 %v1147_v18, %v777_v19 }
 0x251   : > { %v1089_v21 = vmul.f32 -1.442695, %v778_v20 }
 0x253   : > { %1180 = vpow2.f32 %v1089_v21 }
 0x256   : > { %v779_v22 = vpop.f32.mrf.mxu1 }
 0x257   : > { %v780_v23 = vadd.f32 %v1147_v18, %v779_v22 }
 0x259   : > { %v1181_v24 = vpop.eup %1180  ;;  %v1090_v25 = vmul.f32 -1.442695, %v780_v23 }
 0x25a   : > { %v799_v26 = vadd.f32 1.0, %v1181_v24 }
 0x25b   : > { %1182 = vpow2.f32 %v1090_v25 }
 0x25c   : > { %1184 = vrcp.f32 %v799_v26  ;;  %v814_v34 = vand.u32 2147483648, %v799_v26  ;;  %v812_v36 = vand.u32 2147483647, %v799_v26  ;;  %vm808_vm3 = vweird.f32 %v799_v26 }
 0x25e   : > { %v815_v40 = vor.u32 1.1754944e-38, %v814_v34  ;;  %vm813_vm6 = vcmp.eq.f32.partialorder %v812_v36, 8.507059e+37 }
 0x261   : > { %v1183_v27 = vpop.eup %1182 }
 0x262   : > { %v1185_v28 = vpop.eup %1184  ;;  %v800_v29 = vadd.f32 1.0, %v1183_v27 }
 0x263   : > { %v804_v30 = vmul.f32 %v1185_v28, %v799_v26  ;;  %vm809_vm2 = vweird.f32 %v1185_v28 }
 0x264   : > { %1186 = vrcp.f32 %v800_v29  ;;  %v782_v31 = vpop.f32.mrf.mxu2  ;;  %vm810_vm4 = vmor %vm808_vm3, %vm809_vm2  ;;  %v829_v47 = vand.u32 2147483648, %v800_v29  ;;  %v827_v50 = vand.u32 2147483647, %v800_v29  ;;  %vm823_vm8 = vweird.f32 %v800_v29 }
 0x265   : > { %v805_v32 = vsub.f32 1.0, %v804_v30  ;;  %v783_v33 = vadd.f32 %v1147_v18, %v782_v31 }
 0x266   : > { %v830_v54 = vor.u32 1.1754944e-38, %v829_v47  ;;  %vm828_vm10 = vcmp.eq.f32.partialorder %v827_v50, 8.507059e+37 }
 0x267   : > { %v806_v35 = vmul.f32 %v1185_v28, %v805_v32  ;;  %v1091_v37 = vmul.f32 -1.442695, %v783_v33 }
 0x269   : > { %v807_v38 = vadd.f32 %v1185_v28, %v806_v35  ;;  %1188 = vpow2.f32 %v1091_v37 }
 0x26a   : > { %v1187_v39 = vpop.eup %1186 }
 0x26b   : > { %v811_v41 = vsel %vm810_vm4, %v1185_v28, %v807_v38  ;;  %v819_v42 = vmul.f32 %v1187_v39, %v800_v29  ;;  %vm824_vm7 = vweird.f32 %v1187_v39 }
 0x26c   : > { %v816_v43 = vsel %vm813_vm6, %v815_v40, %v811_v41  ;;  %v784_v44 = vpop.f32.mrf.mxu2  ;;  %vm825_vm9 = vmor %vm823_vm8, %vm824_vm7 }
 0x26d   : > { %864 = vst.msk [vmem:[%s1449_s18] sm:$0xff] %vm863_vm5, %v816_v43  ;;  %v820_v45 = vsub.f32 1.0, %v819_v42  ;;  %v785_v46 = vadd.f32 %v1147_v18, %v784_v44 }
 0x26f   : > { %v1189_v48 = vpop.eup %1188  ;;  %v821_v49 = vmul.f32 %v1187_v39, %v820_v45  ;;  %v1092_v51 = vmul.f32 -1.442695, %v785_v46 }
 0x270   : > { %v801_v52 = vadd.f32 1.0, %v1189_v48 }
 0x271   : > { %v822_v53 = vadd.f32 %v1187_v39, %v821_v49  ;;  %1190 = vpow2.f32 %v1092_v51 }
 0x272   : > { %1192 = vrcp.f32 %v801_v52  ;;  %v844_v62 = vand.u32 2147483648, %v801_v52  ;;  %v842_v0 = vand.u32 2147483647, %v801_v52  ;;  %vm838_vm12 = vweird.f32 %v801_v52 }
 0x273   : > { %v826_v55 = vsel %vm825_vm9, %v1187_v39, %v822_v53 }
 0x274   : > { %v831_v56 = vsel %vm828_vm10, %v830_v54, %v826_v55  ;;  %v845_v3 = vor.u32 1.1754944e-38, %v844_v62  ;;  %vm843_vm14 = vcmp.eq.f32.partialorder %v842_v0, 8.507059e+37 }
 0x275   : > { %865 = vst.msk [vmem:[%s1449_s18 + $0x8] sm:$0xff] %vm863_vm5, %v831_v56 }
 0x277   : > { %v1191_v57 = vpop.eup %1190 }
 0x278   : > { %v1193_v58 = vpop.eup %1192  ;;  %v802_v59 = vadd.f32 1.0, %v1191_v57 }
 0x279   : > { %v834_v60 = vmul.f32 %v1193_v58, %v801_v52  ;;  %vm839_vm11 = vweird.f32 %v1193_v58 }
 0x27a   : > { %1194 = vrcp.f32 %v802_v59  ;;  %vm840_vm13 = vmor %vm838_vm12, %vm839_vm11  ;;  %v859_v8 = vand.u32 2147483648, %v802_v59  ;;  %v857_v10 = vand.u32 2147483647, %v802_v59  ;;  %vm853_vm0 = vweird.f32 %v802_v59 }
 0x27b   : > { %v835_v61 = vsub.f32 1.0, %v834_v60 }
 0x27c   : > { %v860_v12 = vor.u32 1.1754944e-38, %v859_v8  ;;  %vm858_vm2 = vcmp.eq.f32.partialorder %v857_v10, 8.507059e+37 }
 0x27d   : > { %v836_v63 = vmul.f32 %v1193_v58, %v835_v61 }
 0x27f   : > { %v837_v1 = vadd.f32 %v1193_v58, %v836_v63 }
 0x280   : > { %v1195_v2 = vpop.eup %1194 }
 0x281   : > { %v841_v4 = vsel %vm840_vm13, %v1193_v58, %v837_v1  ;;  %v849_v5 = vmul.f32 %v1195_v2, %v802_v59  ;;  %vm854_vm15 = vweird.f32 %v1195_v2 }
 0x282   : > { %v846_v6 = vsel %vm843_vm14, %v845_v3, %v841_v4  ;;  %vm855_vm1 = vmor %vm853_vm0, %vm854_vm15 }
 0x283   : > { %866 = vst.msk [vmem:[%s1449_s18 + $0x10] sm:$0xff] %vm863_vm5, %v846_v6  ;;  %v850_v7 = vsub.f32 1.0, %v849_v5 }
 0x285   : > { %v851_v9 = vmul.f32 %v1195_v2, %v850_v7 }
 0x287   : > { %v852_v11 = vadd.f32 %v1195_v2, %v851_v9 }
 0x289   : > { %v856_v13 = vsel %vm855_vm1, %v1195_v2, %v852_v11 }
 0x28a   : > { %v861_v14 = vsel %vm858_vm2, %v860_v12, %v856_v13 }
 0x28b   : > { %867 = vst.msk [vmem:[%s1449_s18 + $0x18] sm:$0xff] %vm863_vm5, %v861_v14 }
 0x28c PF: > { %s21_s11 = sadd.s32 1, %s1202_s11  }
 0x28d   : > { %p18_p4 = scmp.ge.s32.totalorder %s21_s11, 4  }
 0x28f   :  { %20 = sbr.rel (!%p18_p4) target bundleno = 3 (0x3), region = 86 }

</bundles_post_ra>
